<compile_context>
chip_gen: v6e
topology: v6e:2x2x1
jax: 0.10.0
libtpu: 0.0.40
codegen_flags: <defaults>
</compile_context>

<pallas_src>
import numpy as np
import jax
import jax.numpy as jnp
from jax.experimental import pallas as pl
from jax.experimental.pallas import tpu as pltpu  # noqa: F401  (TPU backend symbols)


def _make_fused_kernel(num_heads, negative_slope=0.2):
    """Fused GATEncoder forward: x -> relu(GAT1(x)) -> GAT2(x), single invocation."""
    f32 = jnp.float32

    def _softmax_rows(e, add_mask):
        # LeakyReLU(0.2) -> masked, numerically-stable softmax over source nodes (lanes).
        e = jnp.where(e > 0, e, negative_slope * e)
        e = e + add_mask                                   # -1e30 kills cross-graph edges
        e = e - jnp.max(e, axis=-1, keepdims=True)
        p = jnp.exp(e)
        s = jnp.sum(p, axis=-1, keepdims=True)
        r = pl.reciprocal(s, approx=True)                  # EUP vrcp (otherwise idle slot)
        r = r * (2.0 - s * r)                              # one Newton step -> ~f32-exact
        return p * r

    def kernel(x_ref, w1_ref, asrc1_ref, adst1_ref, hmask1_ref, b1_ref,
               w2_ref, asrc2_ref, adst2_ref, b2_ref, mask_ref, o_ref):
        x = x_ref[...]                                     # (B*N, Fin)
        mask = mask_ref[...]                               # (B*N, B*N) additive block mask

        # ---------------- layer 1: GATConv(Fin -> C1, heads=H, concat), bias, ReLU -------
        xp = jnp.dot(x, w1_ref[...], preferred_element_type=f32)          # (B*N, H*C1)
        # All-head attention scores as two tiny MXU matmuls, already in the layouts the
        # broadcast-add below wants (dst scores as columns, src scores as rows).
        s_dst = jnp.einsum('nd,hd->nh', xp, adst1_ref[...],
                           preferred_element_type=f32)                    # (B*N, H)
        s_src = jnp.einsum('hd,nd->hn', asrc1_ref[...], xp,
                           preferred_element_type=f32)                    # (H, B*N)
        hm = hmask1_ref[...]                                              # (H, H*C1)

        h1 = jnp.zeros_like(xp)
        for h in range(num_heads):   # tiny static unroll; every per-head op is a 2-D slab
            p = _softmax_rows(s_dst[:, h:h + 1] + s_src[h:h + 1, :], mask)  # (B*N, B*N)
            # head-masked xp: this head's result lands directly in its output columns,
            # so the head-sum below IS the concat (no lane-shuffle concatenate).
            h1 = h1 + jnp.dot(p, xp * hm[h:h + 1, :], preferred_element_type=f32)
        h1 = jnp.maximum(h1 + b1_ref[...], 0.0)                           # bias + ReLU

        # ---------------- layer 2: GATConv(H*C1 -> C2, heads=1), bias --------------------
        xp2 = jnp.dot(h1, w2_ref[...], preferred_element_type=f32)        # (B*N, C2)
        s_dst2 = jnp.einsum('nd,hd->nh', xp2, adst2_ref[...],
                            preferred_element_type=f32)                   # (B*N, 1)
        s_src2 = jnp.einsum('hd,nd->hn', asrc2_ref[...], xp2,
                            preferred_element_type=f32)                   # (1, B*N)
        p2 = _softmax_rows(s_dst2 + s_src2, mask)                         # (B*N, B*N)
        o_ref[...] = jnp.dot(p2, xp2, preferred_element_type=f32) + b2_ref[...]

    return kernel


def prepare_gat_params(params):
    """One-time repack of GATConv parameters into kernel-friendly, head-blocked layouts."""
    H, C1 = params["asrc1"].shape

    def blockify(a):  # (H, C1) -> (H, H*C1): head h's vector sits in its own column block
        return (a[:, None, :] * jnp.eye(H, dtype=a.dtype)[:, :, None]).reshape(H, H * C1)

    return {
        "w1": params["w1"], "b1": params["b1"],
        "asrc1f": blockify(params["asrc1"]),
        "adst1f": blockify(params["adst1"]),
        "hmask1": jnp.repeat(jnp.eye(H, dtype=jnp.float32), C1, axis=1),   # (H, H*C1)
        "w2": params["w2"], "b2": params["b2"],
        "asrc2": params["asrc2"], "adst2": params["adst2"],
    }


@jax.jit
def gat_encoder_forward(x, prep):
    """GATEncoder.forward. Accepts (N, F) or (B, N, F); one fused kernel launch."""
    squeeze = x.ndim == 2
    if squeeze:
        x = x[None]
    B, N, Fin = x.shape
    BN = B * N
    H = prep["asrc1f"].shape[0]
    C2 = prep["w2"].shape[1]

    # Additive mask that keeps the single (B*N, B*N) softmax from mixing graphs.
    # Built with numpy at trace time -> embedded constant, zero runtime ops.
    bid = np.repeat(np.arange(B, dtype=np.int32), N)
    batch_mask = jnp.asarray(
        np.where(bid[:, None] == bid[None, :], 0.0, -1e30).astype(np.float32))

    out2d = pl.pallas_call(
        _make_fused_kernel(H),
        out_shape=jax.ShapeDtypeStruct((BN, C2), jnp.float32),
    )(x.reshape(BN, Fin).astype(jnp.float32),
      prep["w1"], prep["asrc1f"], prep["adst1f"], prep["hmask1"], prep["b1"],
      prep["w2"], prep["asrc2"], prep["adst2"], prep["b2"], batch_mask)

    out = out2d.reshape(B, N, C2)
    return out[0] if squeeze else out


# ----------------------- pure-JAX reference for sanity -----------------------
def _gat_layer_ref(x, w, att_src, att_dst, bias, apply_relu, slope=0.2):
    H, C = att_src.shape
    xp = x @ w                                           # (B, N, H*C)
    B, N, _ = xp.shape
    xp = xp.reshape(B, N, H, C)
    s_src = jnp.einsum("bnhc,hc->bnh", xp, att_src)
    s_dst = jnp.einsum("bnhc,hc->bnh", xp, att_dst)
    e = s_dst[:, :, None, :] + s_src[:, None, :, :]      # (B, dst, src, H)
    e = jnp.where(e > 0, e, slope * e)
    a = jax.nn.softmax(e, axis=2)
    out = jnp.einsum("bijh,bjhc->bihc", a, xp).reshape(B, N, H * C)
    out = out + bias
    return jnp.maximum(out, 0.0) if apply_relu else out


def _encoder_ref(x, p):
    h = _gat_layer_ref(x, p["w1"], p["asrc1"], p["adst1"], p["b1"], True)
    return _gat_layer_ref(h, p["w2"], p["asrc2"], p["adst2"], p["b2"], False)


# ------------------------------------ main ------------------------------------
if __name__ == "__main__":
    # Module hyper-parameters (GATConv hidden size is fixed at 8 in GATEncoder)
    n_xdims, gat_nhead, node_num = 4, 2, 8
    hid = 8
    B = 2

    key = jax.random.PRNGKey(0)
    ks = jax.random.split(key, 9)

    params = {
        # GAT1: in=n_xdims, out=8 per head, heads=gat_nhead, concat -> 8*gat_nhead
        "w1":    (jax.random.normal(ks[0], (n_xdims, gat_nhead * hid), jnp.float32) * 0.5),
        "asrc1": (jax.random.normal(ks[1], (gat_nhead, hid), jnp.float32) * 0.5),
        "adst1": (jax.random.normal(ks[2], (gat_nhead, hid), jnp.float32) * 0.5),
        "b1":    (jax.random.normal(ks[3], (1, gat_nhead * hid), jnp.float32) * 0.1),
        # GAT2: in=8*gat_nhead, out=n_xdims, heads=1
        "w2":    (jax.random.normal(ks[4], (gat_nhead * hid, n_xdims), jnp.float32) * 0.5),
        "asrc2": (jax.random.normal(ks[5], (1, n_xdims), jnp.float32) * 0.5),
        "adst2": (jax.random.normal(ks[6], (1, n_xdims), jnp.float32) * 0.5),
        "b2":    (jax.random.normal(ks[7], (1, n_xdims), jnp.float32) * 0.1),
    }

    x = jax.random.normal(ks[8], (B, node_num, n_xdims), jnp.float32)

    prep = jax.tree_util.tree_map(jax.block_until_ready, prepare_gat_params(params))
    out = jax.block_until_ready(gat_encoder_forward(x, prep))
    ref = _encoder_ref(x, params)

    assert out.shape == (B, node_num, n_xdims), out.shape
    assert jnp.allclose(out, ref, atol=1e-3, rtol=1e-3), "mismatch vs JAX reference"
    print("KERNEL_OK")
</pallas_src>

<mosaic_0001>
module attributes {stable_mosaic.version = 11 : i64} {
  func.func @kernel(%arg0: memref<16x4xf32, #tpu.memory_space<vmem>>, %arg1: memref<4x16xf32, #tpu.memory_space<vmem>>, %arg2: memref<2x16xf32, #tpu.memory_space<vmem>>, %arg3: memref<2x16xf32, #tpu.memory_space<vmem>>, %arg4: memref<2x16xf32, #tpu.memory_space<vmem>>, %arg5: memref<1x16xf32, #tpu.memory_space<vmem>>, %arg6: memref<16x4xf32, #tpu.memory_space<vmem>>, %arg7: memref<1x4xf32, #tpu.memory_space<vmem>>, %arg8: memref<1x4xf32, #tpu.memory_space<vmem>>, %arg9: memref<1x4xf32, #tpu.memory_space<vmem>>, %arg10: memref<16x16xf32, #tpu.memory_space<vmem>>, %arg11: memref<16x4xf32, #tpu.memory_space<vmem>>) attributes {dimension_semantics = [], scalar_prefetch = 0 : i64, scratch_operands = 0 : i64, tpu.core_type = #tpu.core_type<tc>} {
    %c0 = arith.constant 0 : index
    %c0_0 = arith.constant 0 : index
    %0 = vector.load %arg0[%c0, %c0_0] : memref<16x4xf32, #tpu.memory_space<vmem>>, vector<16x4xf32>
    %c0_1 = arith.constant 0 : index
    %c0_2 = arith.constant 0 : index
    %1 = vector.load %arg10[%c0_1, %c0_2] : memref<16x16xf32, #tpu.memory_space<vmem>>, vector<16x16xf32>
    %c0_3 = arith.constant 0 : index
    %c0_4 = arith.constant 0 : index
    %2 = vector.load %arg1[%c0_3, %c0_4] : memref<4x16xf32, #tpu.memory_space<vmem>>, vector<4x16xf32>
    %cst = arith.constant dense<0.000000e+00> : vector<16x16xf32>
    %3 = tpu.matmul %0, %2, %cst {dimension_numbers = #tpu.dot_dimension_numbers<[1], [0], [0], [1], [0, 0, 1, 1], [], []>} : vector<16x4xf32>, vector<4x16xf32>, vector<16x16xf32> -> vector<16x16xf32>
    %c0_5 = arith.constant 0 : index
    %c0_6 = arith.constant 0 : index
    %4 = vector.load %arg3[%c0_5, %c0_6] : memref<2x16xf32, #tpu.memory_space<vmem>>, vector<2x16xf32>
    "tpu.trace_start"() <{level = 10 : i32, message = "nd,hd->nh"}> : () -> ()
    %cst_7 = arith.constant dense<0.000000e+00> : vector<16x2xf32>
    %5 = tpu.matmul %3, %4, %cst_7 {dimension_numbers = #tpu.dot_dimension_numbers<[1], [1], [0], [0], [0, 0, 1, 0], [], []>} : vector<16x16xf32>, vector<2x16xf32>, vector<16x2xf32> -> vector<16x2xf32>
    "tpu.trace_stop"() : () -> ()
    %c0_8 = arith.constant 0 : index
    %c0_9 = arith.constant 0 : index
    %6 = vector.load %arg2[%c0_8, %c0_9] : memref<2x16xf32, #tpu.memory_space<vmem>>, vector<2x16xf32>
    "tpu.trace_start"() <{level = 10 : i32, message = "hd,nd->hn"}> : () -> ()
    %cst_10 = arith.constant dense<0.000000e+00> : vector<2x16xf32>
    %7 = tpu.matmul %6, %3, %cst_10 {dimension_numbers = #tpu.dot_dimension_numbers<[1], [1], [0], [0], [0, 0, 1, 0], [], []>} : vector<2x16xf32>, vector<16x16xf32>, vector<2x16xf32> -> vector<2x16xf32>
    "tpu.trace_stop"() : () -> ()
    %c0_11 = arith.constant 0 : index
    %c0_12 = arith.constant 0 : index
    %8 = vector.load %arg4[%c0_11, %c0_12] : memref<2x16xf32, #tpu.memory_space<vmem>>, vector<2x16xf32>
    %cst_13 = arith.constant 0.000000e+00 : f32
    %9 = vector.broadcast %cst_13 : f32 to vector<16x16xf32>
    %10 = vector.extract_strided_slice %5 {offsets = [0, 0], sizes = [16, 1], strides = [1, 1]} : vector<16x2xf32> to vector<16x1xf32>
    %11 = vector.extract_strided_slice %7 {offsets = [0, 0], sizes = [1, 16], strides = [1, 1]} : vector<2x16xf32> to vector<1x16xf32>
    %12 = vector.broadcast %10 : vector<16x1xf32> to vector<16x16xf32>
    %13 = vector.broadcast %11 : vector<1x16xf32> to vector<16x16xf32>
    %14 = arith.addf %12, %13 : vector<16x16xf32>
    %cst_14 = arith.constant 0.000000e+00 : f32
    %15 = vector.broadcast %cst_14 : f32 to vector<16x16xf32>
    %16 = arith.cmpf ogt, %14, %15 : vector<16x16xf32>
    %cst_15 = arith.constant 2.000000e-01 : f32
    %17 = vector.broadcast %cst_15 : f32 to vector<16x16xf32>
    %18 = arith.mulf %17, %14 : vector<16x16xf32>
    %19 = arith.select %16, %14, %18 : vector<16x16xi1>, vector<16x16xf32>
    %20 = arith.addf %19, %1 : vector<16x16xf32>
    %cst_16 = arith.constant dense<0xFF800000> : vector<16xf32>
    %21 = vector.multi_reduction <maximumf>, %20, %cst_16 [1] : vector<16x16xf32> to vector<16xf32>
    %22 = vector.shape_cast %21 : vector<16xf32> to vector<16x1xf32>
    %23 = vector.broadcast %22 : vector<16x1xf32> to vector<16x16xf32>
    %24 = arith.subf %20, %23 : vector<16x16xf32>
    %25 = math.exp %24 : vector<16x16xf32>
    %cst_17 = arith.constant dense<0.000000e+00> : vector<16xf32>
    %26 = vector.multi_reduction <add>, %25, %cst_17 [1] : vector<16x16xf32> to vector<16xf32>
    %27 = vector.shape_cast %26 : vector<16xf32> to vector<16x1xf32>
    %28 = tpu.reciprocal %27 {approx = true} : vector<16x1xf32> -> vector<16x1xf32>
    %29 = arith.mulf %27, %28 : vector<16x1xf32>
    %cst_18 = arith.constant 2.000000e+00 : f32
    %30 = vector.broadcast %cst_18 : f32 to vector<16x1xf32>
    %31 = arith.subf %30, %29 : vector<16x1xf32>
    %32 = arith.mulf %28, %31 : vector<16x1xf32>
    %33 = vector.broadcast %32 : vector<16x1xf32> to vector<16x16xf32>
    %34 = arith.mulf %25, %33 : vector<16x16xf32>
    %35 = vector.extract_strided_slice %8 {offsets = [0, 0], sizes = [1, 16], strides = [1, 1]} : vector<2x16xf32> to vector<1x16xf32>
    %36 = vector.broadcast %35 : vector<1x16xf32> to vector<16x16xf32>
    %37 = arith.mulf %3, %36 : vector<16x16xf32>
    %cst_19 = arith.constant dense<0.000000e+00> : vector<16x16xf32>
    %38 = tpu.matmul %34, %37, %cst_19 {dimension_numbers = #tpu.dot_dimension_numbers<[1], [0], [0], [1], [0, 0, 1, 1], [], []>} : vector<16x16xf32>, vector<16x16xf32>, vector<16x16xf32> -> vector<16x16xf32>
    %39 = arith.addf %9, %38 : vector<16x16xf32>
    %40 = vector.extract_strided_slice %5 {offsets = [0, 1], sizes = [16, 1], strides = [1, 1]} : vector<16x2xf32> to vector<16x1xf32>
    %41 = vector.extract_strided_slice %7 {offsets = [1, 0], sizes = [1, 16], strides = [1, 1]} : vector<2x16xf32> to vector<1x16xf32>
    %42 = vector.broadcast %40 : vector<16x1xf32> to vector<16x16xf32>
    %43 = vector.broadcast %41 : vector<1x16xf32> to vector<16x16xf32>
    %44 = arith.addf %42, %43 : vector<16x16xf32>
    %cst_20 = arith.constant 0.000000e+00 : f32
    %45 = vector.broadcast %cst_20 : f32 to vector<16x16xf32>
    %46 = arith.cmpf ogt, %44, %45 : vector<16x16xf32>
    %cst_21 = arith.constant 2.000000e-01 : f32
    %47 = vector.broadcast %cst_21 : f32 to vector<16x16xf32>
    %48 = arith.mulf %47, %44 : vector<16x16xf32>
    %49 = arith.select %46, %44, %48 : vector<16x16xi1>, vector<16x16xf32>
    %50 = arith.addf %49, %1 : vector<16x16xf32>
    %cst_22 = arith.constant dense<0xFF800000> : vector<16xf32>
    %51 = vector.multi_reduction <maximumf>, %50, %cst_22 [1] : vector<16x16xf32> to vector<16xf32>
    %52 = vector.shape_cast %51 : vector<16xf32> to vector<16x1xf32>
    %53 = vector.broadcast %52 : vector<16x1xf32> to vector<16x16xf32>
    %54 = arith.subf %50, %53 : vector<16x16xf32>
    %55 = math.exp %54 : vector<16x16xf32>
    %cst_23 = arith.constant dense<0.000000e+00> : vector<16xf32>
    %56 = vector.multi_reduction <add>, %55, %cst_23 [1] : vector<16x16xf32> to vector<16xf32>
    %57 = vector.shape_cast %56 : vector<16xf32> to vector<16x1xf32>
    %58 = tpu.reciprocal %57 {approx = true} : vector<16x1xf32> -> vector<16x1xf32>
    %59 = arith.mulf %57, %58 : vector<16x1xf32>
    %cst_24 = arith.constant 2.000000e+00 : f32
    %60 = vector.broadcast %cst_24 : f32 to vector<16x1xf32>
    %61 = arith.subf %60, %59 : vector<16x1xf32>
    %62 = arith.mulf %58, %61 : vector<16x1xf32>
    %63 = vector.broadcast %62 : vector<16x1xf32> to vector<16x16xf32>
    %64 = arith.mulf %55, %63 : vector<16x16xf32>
    %65 = vector.extract_strided_slice %8 {offsets = [1, 0], sizes = [1, 16], strides = [1, 1]} : vector<2x16xf32> to vector<1x16xf32>
    %66 = vector.broadcast %65 : vector<1x16xf32> to vector<16x16xf32>
    %67 = arith.mulf %3, %66 : vector<16x16xf32>
    %cst_25 = arith.constant dense<0.000000e+00> : vector<16x16xf32>
    %68 = tpu.matmul %64, %67, %cst_25 {dimension_numbers = #tpu.dot_dimension_numbers<[1], [0], [0], [1], [0, 0, 1, 1], [], []>} : vector<16x16xf32>, vector<16x16xf32>, vector<16x16xf32> -> vector<16x16xf32>
    %69 = arith.addf %39, %68 : vector<16x16xf32>
    %c0_26 = arith.constant 0 : index
    %c0_27 = arith.constant 0 : index
    %70 = vector.load %arg5[%c0_26, %c0_27] : memref<1x16xf32, #tpu.memory_space<vmem>>, vector<1x16xf32>
    %71 = vector.broadcast %70 : vector<1x16xf32> to vector<16x16xf32>
    %72 = arith.addf %69, %71 : vector<16x16xf32>
    %cst_28 = arith.constant 0.000000e+00 : f32
    %73 = vector.broadcast %cst_28 : f32 to vector<16x16xf32>
    %74 = arith.maximumf %72, %73 : vector<16x16xf32>
    %c0_29 = arith.constant 0 : index
    %c0_30 = arith.constant 0 : index
    %75 = vector.load %arg6[%c0_29, %c0_30] : memref<16x4xf32, #tpu.memory_space<vmem>>, vector<16x4xf32>
    %cst_31 = arith.constant dense<0.000000e+00> : vector<16x4xf32>
    %76 = tpu.matmul %74, %75, %cst_31 {dimension_numbers = #tpu.dot_dimension_numbers<[1], [0], [0], [1], [0, 0, 1, 1], [], []>} : vector<16x16xf32>, vector<16x4xf32>, vector<16x4xf32> -> vector<16x4xf32>
    %c0_32 = arith.constant 0 : index
    %c0_33 = arith.constant 0 : index
    %77 = vector.load %arg8[%c0_32, %c0_33] : memref<1x4xf32, #tpu.memory_space<vmem>>, vector<1x4xf32>
    "tpu.trace_start"() <{level = 10 : i32, message = "nd,hd->nh"}> : () -> ()
    %cst_34 = arith.constant dense<0.000000e+00> : vector<16x1xf32>
    %78 = tpu.matmul %76, %77, %cst_34 {dimension_numbers = #tpu.dot_dimension_numbers<[1], [1], [0], [0], [0, 0, 1, 0], [], []>} : vector<16x4xf32>, vector<1x4xf32>, vector<16x1xf32> -> vector<16x1xf32>
    "tpu.trace_stop"() : () -> ()
    %c0_35 = arith.constant 0 : index
    %c0_36 = arith.constant 0 : index
    %79 = vector.load %arg7[%c0_35, %c0_36] : memref<1x4xf32, #tpu.memory_space<vmem>>, vector<1x4xf32>
    "tpu.trace_start"() <{level = 10 : i32, message = "hd,nd->hn"}> : () -> ()
    %cst_37 = arith.constant dense<0.000000e+00> : vector<1x16xf32>
    %80 = tpu.matmul %79, %76, %cst_37 {dimension_numbers = #tpu.dot_dimension_numbers<[1], [1], [0], [0], [0, 0, 1, 0], [], []>} : vector<1x4xf32>, vector<16x4xf32>, vector<1x16xf32> -> vector<1x16xf32>
    "tpu.trace_stop"() : () -> ()
    %81 = vector.broadcast %78 : vector<16x1xf32> to vector<16x16xf32>
    %82 = vector.broadcast %80 : vector<1x16xf32> to vector<16x16xf32>
    %83 = arith.addf %81, %82 : vector<16x16xf32>
    %cst_38 = arith.constant 0.000000e+00 : f32
    %84 = vector.broadcast %cst_38 : f32 to vector<16x16xf32>
    %85 = arith.cmpf ogt, %83, %84 : vector<16x16xf32>
    %cst_39 = arith.constant 2.000000e-01 : f32
    %86 = vector.broadcast %cst_39 : f32 to vector<16x16xf32>
    %87 = arith.mulf %86, %83 : vector<16x16xf32>
    %88 = arith.select %85, %83, %87 : vector<16x16xi1>, vector<16x16xf32>
    %89 = arith.addf %88, %1 : vector<16x16xf32>
    %cst_40 = arith.constant dense<0xFF800000> : vector<16xf32>
    %90 = vector.multi_reduction <maximumf>, %89, %cst_40 [1] : vector<16x16xf32> to vector<16xf32>
    %91 = vector.shape_cast %90 : vector<16xf32> to vector<16x1xf32>
    %92 = vector.broadcast %91 : vector<16x1xf32> to vector<16x16xf32>
    %93 = arith.subf %89, %92 : vector<16x16xf32>
    %94 = math.exp %93 : vector<16x16xf32>
    %cst_41 = arith.constant dense<0.000000e+00> : vector<16xf32>
    %95 = vector.multi_reduction <add>, %94, %cst_41 [1] : vector<16x16xf32> to vector<16xf32>
    %96 = vector.shape_cast %95 : vector<16xf32> to vector<16x1xf32>
    %97 = tpu.reciprocal %96 {approx = true} : vector<16x1xf32> -> vector<16x1xf32>
    %98 = arith.mulf %96, %97 : vector<16x1xf32>
    %cst_42 = arith.constant 2.000000e+00 : f32
    %99 = vector.broadcast %cst_42 : f32 to vector<16x1xf32>
    %100 = arith.subf %99, %98 : vector<16x1xf32>
    %101 = arith.mulf %97, %100 : vector<16x1xf32>
    %102 = vector.broadcast %101 : vector<16x1xf32> to vector<16x16xf32>
    %103 = arith.mulf %94, %102 : vector<16x16xf32>
    %cst_43 = arith.constant dense<0.000000e+00> : vector<16x4xf32>
    %104 = tpu.matmul %103, %76, %cst_43 {dimension_numbers = #tpu.dot_dimension_numbers<[1], [0], [0], [1], [0, 0, 1, 1], [], []>} : vector<16x16xf32>, vector<16x4xf32>, vector<16x4xf32> -> vector<16x4xf32>
    %c0_44 = arith.constant 0 : index
    %c0_45 = arith.constant 0 : index
    %105 = vector.load %arg9[%c0_44, %c0_45] : memref<1x4xf32, #tpu.memory_space<vmem>>, vector<1x4xf32>
    %106 = vector.broadcast %105 : vector<1x4xf32> to vector<16x4xf32>
    %107 = arith.addf %104, %106 : vector<16x4xf32>
    %c0_46 = arith.constant 0 : index
    %c0_47 = arith.constant 0 : index
    %108 = vector.load %arg11[%c0_46, %c0_47] : memref<16x4xf32, #tpu.memory_space<vmem>>, vector<16x4xf32>
    tpu.vector_store %arg11[%c0_46, %c0_47], %107 {strides = array<i32>} : memref<16x4xf32, #tpu.memory_space<vmem>>, vector<16x4xf32>,
    return
  }
}

</mosaic_0001>

<bundles_post_ra>
// kernel: gat_encoder_forward.1
= control target key start
LH: loop header
LB: loop body
LE: loop exit
PB: predicated region body
PF: predicated region fallthrough
CT: control target
= control target key end

     0   :  { %vm50_vm0 = vcmask 1043456   ;;  %vm43_vm1 = vcmask 31744   ;;  %vm130_vm2 = vcmask 130048   ;;  %v1024_v4 = vmov 0.0   ;;  %s1209_s1 = inlined_call_operand.vmem [shape: f32[4,16], index: 1, kind: input, shape index: {}]   ;;  %s1210_s0 = inlined_call_operand.vmem [shape: f32[16,4], index: 0, kind: input, shape index: {}]   ;;  %s1211_s3 = inlined_call_operand.vmem [shape: f32[2,16], index: 3, kind: input, shape index: {}]   ;;  %s1212_s4 = inlined_call_operand.vmem [shape: f32[2,16], index: 4, kind: input, shape index: {}]   ;;  %s1213_s2 = inlined_call_operand.vmem [shape: f32[2,16], index: 2, kind: input, shape index: {}]   ;;  %s1214_s10 = inlined_call_operand.vmem [shape: f32[16,16], index: 10, kind: input, shape index: {}]   ;;  %s1215_s6 = inlined_call_operand.vmem [shape: f32[16,4], index: 6, kind: input, shape index: {}]   ;;  %s1216_s5 = inlined_call_operand.vmem [shape: f32[1,16], index: 5, kind: input, shape index: {}]   ;;  %s1217_s8 = inlined_call_operand.vmem [shape: f32[1,4], index: 8, kind: input, shape index: {}]   ;;  %s1218_s7 = inlined_call_operand.vmem [shape: f32[1,4], index: 7, kind: input, shape index: {}]   ;;  %s1219_s9 = inlined_call_operand.vmem [shape: f32[1,4], index: 9, kind: input, shape index: {}]   ;;  %s1220_s11 = inlined_call_operand.vmem [shape: f32[16,4], index: 11, kind: output, shape index: {}]  }
   0x1   :  { %v42_v0 = vld [vmem:[%s1209_s1] sm:$0xf]  ;;  %v39_v2 = vld [vmem:[%s1210_s0 + $0x8] sm:$0xff]  ;;  %vm1025_vm3 = vmmov 0   ;;  %v300_v5 = vlaneseq  ;;  %v1026_v18 = vmov 1   ;;  %v1027_v19 = vmov 0  }
   0x2   :  { %v38_v1 = vld [vmem:[%s1210_s0] sm:$0xff]  ;;  %942 = vmatprep.subr.msk.mxu0 %vm50_vm0, %v42_v0  ;;  %998 = vset.pattern.permute.xlu0 %v1026_v18  ;;  %v1143_v40 = vld [vmem:[%s1214_s10 + $0x8] sm:$0xff] }
   0x3   :  { %944 = vmatprep.mubr.msk.f32.mxu0 %vm43_vm1, %v38_v1  ;;  %v129_v3 = vld [vmem:[%s1211_s3] sm:$0x3]  ;;  %943 = vmatpush3.msk.msra.mxu0 %vm50_vm0, %v42_v0  ;;  %v301_v6 = vshrl.u32 %v300_v5, 7 }
   0x4   :  { %947 = vmatprep.subr.msk.mxu1 %vm130_vm2, %v129_v3  ;;  %945 = vmatmul.mubr.msk.f32.vlgmr.msra.gmra.mxu0 %vm43_vm1, %v39_v2  ;;  %v289_v8 = vld [vmem:[%s1212_s4] sm:$0x3] }
   0x5   :  { %948 = vmatpush3.xpose.msk.msra.mxu1 %vm130_vm2, %v129_v3  ;;  %952 = vmatprep.subr.mxu0 %v1024_v4  ;;  %v358_v7 = vsub.s32 1, %v301_v6  ;;  %v1110_v10 = vsub.s32 0, %v301_v6  ;;  %v215_v16 = vld [vmem:[%s1213_s2] sm:$0x3] }
   0x6   :  { %956 = vmatprep.mubr.msk.f32.mxu0 %vm1025_vm3, %v1024_v4  ;;  %999 = vset.pattern.permute.xlu1 %v1027_v19  ;;  %v1137_v30 = vld [vmem:[%s1214_s10] sm:$0xff] }
   0x7   :  { %v401_v9 = vrot.slane %v289_v8, %v358_v7  ;;  %v1117_v14 = vrot.slane %v289_v8, %v1110_v10 }
  0xc4   :  { %v946_v11 = vpop.f32.mrf.mxu0 }
  0xc5   :  { %953 = vmatpush3.xpose.msk.msra.mxu0 %vm130_vm2, %v946_v11  ;;  %v403_v12 = vmul.f32 %v946_v11, %v401_v9  ;;  %v1129_v17 = vmul.f32 %v946_v11, %v1117_v14 }
  0xc6   :  { %v1113_v13 = vpop.f32.mrf.mxu0  ;;  %954 = vmatprep.subr.mxu0 %v1024_v4 }
  0xc7   :  { %949 = vmatprep.mubr.msk.f32.mxu1 %vm130_vm2, %v1113_v13  ;;  %959 = vmatprep.subr.mxu1 %v403_v12  ;;  %v402_v15 = vmul.f32 %v401_v9, %v1113_v13 }
  0xc8   :  { %950 = vmatmul.mubr.msk.f32.vlgmr.msra.gmra.mxu1 %vm130_vm2, %v946_v11 }
  0xc9   :  { %960 = vmatpush3.msra.mxu1 %v403_v12  ;;  %955 = vmatpush3.xpose.msk.msra.mxu0 %vm130_vm2, %v1113_v13 }
  0xca   :  { %961 = vmatprep.subr.mxu1 %v402_v15 }
  0xcb   :  { %962 = vmatpush3.msra.mxu1 %v402_v15 }
  0xcc   :  { %966 = vmatprep.subr.mxu1 %v1129_v17  ;;  %957 = vmatmul.mubr.msk.f32.vlgmr.msra.gmra.mxu0 %vm130_vm2, %v215_v16 }
 0x188   :  { %v951_v20 = vpop.f32.mrf.mxu1 }
 0x18a   :  { %v206_v21 = vpop.f32.mrf.mxu1 }
 0x18b   :  { %292 = vperm.xlu1 %999, %v206_v21   ;;  %349 = vperm.xlu0 %998, %v206_v21  }
 0x18c   :  { %v285_v22 = vpop.f32.mrf.mxu0 }
 0x18d   :  { %v303_v24 = vrot.slane %v285_v22, %v1110_v10  ;;  %v359_v25 = vrot.slane %v285_v22, %v358_v7 }
 0x18e   :  { %v958_v23 = vpop.f32.mrf.mxu0 }
 0x18f   :  { %297 = vperm.xlu1 %999, %v951_v20   ;;  %353 = vperm.xlu0 %998, %v951_v20  }
 0x206   :  { %v293_v26 = vpop.permute.xlu1 %292  ;;  %v350_v27 = vpop.permute.xlu0 %349 }
 0x207   :  { %v304_v28 = vadd.f32 %v303_v24, %v293_v26  ;;  %v360_v29 = vadd.f32 %v359_v25, %v350_v27 }
 0x209   :  { %vm306_vm4 = vcmp.gt.f32.partialorder %v304_v28, 0.0  ;;  %v308_v31 = vmul.f32 0.2, %v304_v28  ;;  %vm362_vm5 = vcmp.gt.f32.partialorder %v360_v29, 0.0  ;;  %v364_v32 = vmul.f32 0.2, %v360_v29 }
 0x20a   :  { %v298_v33 = vpop.permute.xlu1 %297  ;;  %v354_v34 = vpop.permute.xlu0 %353 }
 0x20b   :  { %v305_v35 = vadd.f32 %v303_v24, %v298_v33  ;;  %v361_v36 = vadd.f32 %v359_v25, %v354_v34  ;;  %v366_v37 = vsel %vm362_vm5, %v360_v29, %v364_v32  ;;  %v310_v38 = vsel %vm306_vm4, %v304_v28, %v308_v31 }
 0x20c   :  { %v368_v39 = vadd.f32 %v366_v37, %v1137_v30  ;;  %v312_v44 = vadd.f32 %v310_v38, %v1137_v30  ;;  %v346_v37 = vmul.f32 %v1117_v14, %v1113_v13  ;;  %v577_v13 = vld [vmem:[%s1215_s6] sm:$0xff] }
 0x20d   :  { %vm307_vm6 = vcmp.gt.f32.partialorder %v305_v35, 0.0  ;;  %v309_v41 = vmul.f32 0.2, %v305_v35  ;;  %vm363_vm7 = vcmp.gt.f32.partialorder %v361_v36, 0.0  ;;  %v365_v42 = vmul.f32 0.2, %v361_v36 }
 0x20e   :  { %v370_v43 = vsel %vm130_vm2, %v368_v39, -inf  ;;  %v314_v48 = vsel %vm130_vm2, %v312_v44, -inf }
 0x20f   :  { %371 = vmax.xlane.f32.xlu0 %v370_v43  ;;  %v367_v45 = vsel %vm363_vm7, %v361_v36, %v365_v42  ;;  %v311_v46 = vsel %vm307_vm6, %v305_v35, %v309_v41  ;;  %v904_v43 = vld [vmem:[%s1216_s5] ss:$0 sm:$0xff] }
 0x210   :  { %v369_v47 = vadd.f32 %v367_v45, %v1143_v40  ;;  %v313_v50 = vadd.f32 %v311_v46, %v1143_v40 }
 0x212   :  { %v373_v49 = vsel %vm130_vm2, %v369_v47, -inf  ;;  %v317_v51 = vsel %vm130_vm2, %v313_v50, -inf }
 0x213   :  { %315 = vmax.xlane.f32.xlu0 %v314_v48  ;;  %374 = vmax.xlane.f32.xlu1 %v373_v49 }
 0x217   :  { %318 = vmax.xlane.f32.xlu0 %v317_v51 }
 0x298   :  { %v372_v52 = vpop.xlane.xlu0 %371 }
 0x299   :  { %v376_v53 = vsub.f32 %v368_v39, %v372_v52  ;;  %v578_v39 = vld [vmem:[%s1215_s6 + $0x8] sm:$0xff] }
 0x29a   :  { %973 = vmatprep.subr.mxu0 %v578_v39 }
 0x29b   :  { %v378_v54 = vmul.f32 1.442695, %v376_v53  ;;  %974 = vmatpush3.msra.mxu0 %v578_v39 }
 0x29c   :  { %v375_v55 = vpop.xlane.xlu1 %374  ;;  %v316_v56 = vpop.xlane.xlu0 %315  ;;  %975 = vmatprep.subr.mxu0 %v577_v13 }
 0x29d   :  { %1000 = vpow2.f32 %v378_v54  ;;  %v377_v57 = vsub.f32 %v369_v47, %v375_v55  ;;  %v320_v58 = vsub.f32 %v312_v44, %v316_v56  ;;  %976 = vmatpush3.msra.mxu0 %v577_v13 }
 0x29f   :  { %v380_v59 = vmul.f32 1.442695, %v377_v57  ;;  %v322_v60 = vmul.f32 1.442695, %v320_v58  ;;  %v675_v57 = vld [vmem:[%s1218_s7] sm:$0x1] }
 0x2a0   :  { %v319_v61 = vpop.xlane.xlu0 %318 }
 0x2a1   :  { %1002 = vpow2.f32 %v380_v59  ;;  %v321_v62 = vsub.f32 %v313_v50, %v319_v61  ;;  %v907_v50 = vld [vmem:[%s1217_s8] ss:$0 sm:$0xff] }
 0x2a2   :  { %1004 = vpow2.f32 %v322_v60 }
 0x2a3   :  { %v324_v63 = vmul.f32 1.442695, %v321_v62 }
 0x2a5   :  { %1006 = vpow2.f32 %v324_v63 }
 0x2aa   :  { %v1001_v0 = vpop.eup %1000 }
 0x2ab   :  { %v382_v1 = vsel %vm130_vm2, %v1001_v0, 0.0 }
 0x2ac   :  { %383 = vadd.xlane.f32.xlu1 %v382_v1 }
 0x2ae   :  { %v1003_v2 = vpop.eup %1002 }
 0x2af   :  { %v1005_v3 = vpop.eup %1004  ;;  %v385_v5 = vsel %vm130_vm2, %v1003_v2, 0.0 }
 0x2b0   :  { %386 = vadd.xlane.f32.xlu0 %v385_v5  ;;  %v326_v6 = vsel %vm130_vm2, %v1005_v3, 0.0 }
 0x2b1   :  { %327 = vadd.xlane.f32.xlu1 %v326_v6 }
 0x2b2   :  { %v1007_v7 = vpop.eup %1006 }
 0x2b3   :  { %v329_v8 = vsel %vm130_vm2, %v1007_v7, 0.0 }
 0x2b4   :  { %330 = vadd.xlane.f32.xlu0 %v329_v8 }
 0x335   :  { %v384_v9 = vpop.xlane.xlu1 %383 }
 0x336   :  { %1008 = vrcp.f32 %v384_v9 }
 0x339   :  { %v387_v11 = vpop.xlane.xlu0 %386 }
 0x33a   :  { %v328_v12 = vpop.xlane.xlu1 %327  ;;  %1010 = vrcp.f32 %v387_v11 }
 0x33b   :  { %1012 = vrcp.f32 %v328_v12 }
 0x33d   :  { %v331_v15 = vpop.xlane.xlu0 %330 }
 0x33e   :  { %1014 = vrcp.f32 %v331_v15 }
 0x343   :  { %v1009_v16 = vpop.eup %1008 }
 0x344   :  { %v390_v18 = vmul.f32 %v1009_v16, %v384_v9 }
 0x346   :  { %v392_v19 = vsub.f32 2.0, %v390_v18 }
 0x347   :  { %v1011_v20 = vpop.eup %1010 }
 0x348   :  { %v1013_v21 = vpop.eup %1012  ;;  %v394_v22 = vmul.f32 %v1009_v16, %v392_v19  ;;  %v391_v23 = vmul.f32 %v1011_v20, %v387_v11 }
 0x349   :  { %v334_v24 = vmul.f32 %v1013_v21, %v328_v12 }
 0x34a   :  { %v396_v25 = vmul.f32 %v1001_v0, %v394_v22  ;;  %v393_v26 = vsub.f32 2.0, %v391_v23 }
 0x34b   :  { %v1015_v27 = vpop.eup %1014  ;;  %v336_v28 = vsub.f32 2.0, %v334_v24 }
 0x34c   :  { %v395_v29 = vmul.f32 %v1011_v20, %v393_v26  ;;  %v335_v31 = vmul.f32 %v1015_v27, %v331_v15  ;;  %963 = vmatprep.mubr.msk.f32.mxu1 %vm130_vm2, %v396_v25 }
 0x34d   :  { %v338_v32 = vmul.f32 %v1013_v21, %v336_v28 }
 0x34e   :  { %v397_v33 = vmul.f32 %v1003_v2, %v395_v29  ;;  %v337_v34 = vsub.f32 2.0, %v335_v31 }
 0x34f   :  { %v340_v35 = vmul.f32 %v1005_v3, %v338_v32 }
 0x350   :  { %v339_v36 = vmul.f32 %v1015_v27, %v337_v34  ;;  %964 = vmatmul.mubr.msk.f32.vlgmr.msra.gmra.mxu1 %vm130_vm2, %v397_v33  ;;  %v911_v33 = vld [vmem:[%s1219_s9] ss:$0 sm:$0xff] }
 0x351   :  { %967 = vmatpush3.msra.mxu1 %v1129_v17  ;;  %970 = vmatprep.mubr.msk.f32.mxu1 %vm130_vm2, %v340_v35 }
 0x352   :  { %v341_v38 = vmul.f32 %v1007_v7, %v339_v36  ;;  %968 = vmatprep.subr.mxu1 %v346_v37 }
 0x353   :  { %969 = vmatpush3.msra.mxu1 %v346_v37 }
 0x354   :  { %971 = vmatmul.mubr.msk.f32.vlgmr.msra.gmra.mxu1 %vm130_vm2, %v341_v38  ;;  %980 = vmatprep.subr.mxu1 %v1024_v4 }
 0x355   :  { %984 = vmatprep.mubr.msk.f32.mxu1 %vm1025_vm3, %v1024_v4 }
 0x410   :  { %v965_v14 = vpop.f32.mrf.mxu1 }
 0x412   :  { %v476_v17 = vpop.f32.mrf.mxu1 }
 0x414   :  { %v972_v41 = vpop.f32.mrf.mxu1 }
 0x415   :  { %v563_v42 = vadd.f32 %v972_v41, %v965_v14 }
 0x416   :  { %v557_v44 = vpop.f32.mrf.mxu1 }
 0x417   :  { %v558_v45 = vadd.f32 %v557_v44, %v476_v17  ;;  %v574_v46 = vadd.f32 %v904_v43, %v563_v42 }
 0x419   :  { %v573_v47 = vadd.f32 %v904_v43, %v558_v45  ;;  %v576_v49 = vmax.f32 %v574_v46, 0.0 }
 0x41b   :  { %v575_v48 = vmax.f32 %v573_v47, 0.0 }
 0x41d   :  { %977 = vmatprep.mubr.msk.f32.mxu0 %vm130_vm2, %v575_v48 }
 0x41e   :  { %978 = vmatmul.mubr.msk.f32.vlgmr.msra.gmra.mxu0 %vm130_vm2, %v576_v49 }
 0x4de   :  { %v979_v51 = vpop.f32.mrf.mxu0 }
 0x4df   :  { %981 = vmatpush3.xpose.msk.msra.mxu1 %vm43_vm1, %v979_v51  ;;  %987 = vmatprep.subr.mxu0 %v979_v51  ;;  %v668_v52 = vmul.f32 %v979_v51, %v907_v50 }
 0x4e0   :  { %v651_v53 = vpop.f32.mrf.mxu0  ;;  %988 = vmatpush3.msra.mxu0 %v979_v51  ;;  %982 = vmatprep.subr.mxu1 %v1024_v4 }
 0x4e1   :  { %989 = vmatprep.subr.mxu0 %v651_v53  ;;  %v672_v54 = vsel %vm43_vm1, %v668_v52, 0.0  ;;  %v667_v55 = vmul.f32 %v907_v50, %v651_v53 }
 0x4e2   :  { %673 = vadd.xlane.f32.xlu0 %v672_v54  ;;  %990 = vmatpush3.msra.mxu0 %v651_v53 }
 0x4e3   :  { %983 = vmatpush3.xpose.msk.msra.mxu1 %vm43_vm1, %v651_v53  ;;  %v669_v56 = vsel %vm43_vm1, %v667_v55, 0.0 }
 0x4e4   :  { %670 = vadd.xlane.f32.xlu1 %v669_v56 }
 0x4e6   :  { %985 = vmatmul.mubr.msk.f32.vlgmr.msra.gmra.mxu1 %vm43_vm1, %v675_v57 }
 0x56b   :  { %v674_v59 = vpop.xlane.xlu0 %673 }
 0x56d   :  { %v671_v60 = vpop.xlane.xlu1 %670 }
 0x5a6   :  { %v751_v58 = vpop.f32.mrf.mxu1 }
 0x5a7   :  { %v758_v4 = vrot.slane %v751_v58, %v1110_v10 }
 0x5a8   :  { %v986_v61 = vpop.f32.mrf.mxu1 }
 0x5a9   :  { %v759_v62 = vadd.f32 %v758_v4, %v671_v60  ;;  %v760_v63 = vadd.f32 %v758_v4, %v674_v59 }
 0x5ab   :  { %v763_v0 = vmul.f32 0.2, %v759_v62  ;;  %v764_v1 = vmul.f32 0.2, %v760_v63  ;;  %vm762_vm8 = vcmp.gt.f32.partialorder %v760_v63, 0.0  ;;  %vm761_vm9 = vcmp.gt.f32.partialorder %v759_v62, 0.0 }
 0x5ad   :  { %v766_v2 = vsel %vm762_vm8, %v760_v63, %v764_v1  ;;  %v765_v3 = vsel %vm761_vm9, %v759_v62, %v763_v0 }
 0x5ae   :  { %v768_v5 = vadd.f32 %v766_v2, %v1143_v40  ;;  %v767_v6 = vadd.f32 %v765_v3, %v1137_v30 }
 0x5b0   :  { %v772_v7 = vsel %vm130_vm2, %v768_v5, -inf  ;;  %v769_v8 = vsel %vm130_vm2, %v767_v6, -inf }
 0x5b1   :  { %773 = vmax.xlane.f32.xlu0 %v772_v7  ;;  %770 = vmax.xlane.f32.xlu1 %v769_v8 }
 0x63a   :  { %v774_v10 = vpop.xlane.xlu0 %773  ;;  %v771_v9 = vpop.xlane.xlu1 %770 }
 0x63b   :  { %v776_v11 = vsub.f32 %v768_v5, %v774_v10  ;;  %v775_v12 = vsub.f32 %v767_v6, %v771_v9 }
 0x63d   :  { %v779_v15 = vmul.f32 1.442695, %v776_v11  ;;  %v777_v16 = vmul.f32 1.442695, %v775_v12 }
 0x63f   :  { %1016 = vpow2.f32 %v779_v15 }
 0x640   :  { %1018 = vpow2.f32 %v777_v16 }
 0x64c   :  { %v1017_v18 = vpop.eup %1016 }
 0x64d   :  { %v1019_v19 = vpop.eup %1018  ;;  %v784_v40 = vsel %vm130_vm2, %v1017_v18, 0.0 }
 0x64e   :  { %785 = vadd.xlane.f32.xlu0 %v784_v40  ;;  %v781_v30 = vsel %vm130_vm2, %v1019_v19, 0.0 }
 0x64f   :  { %782 = vadd.xlane.f32.xlu1 %v781_v30 }
 0x6d7   :  { %v786_v20 = vpop.xlane.xlu0 %785 }
 0x6d8   :  { %1020 = vrcp.f32 %v786_v20  ;;  %v783_v21 = vpop.xlane.xlu1 %782 }
 0x6d9   :  { %1022 = vrcp.f32 %v783_v21 }
 0x6e5   :  { %v1021_v22 = vpop.eup %1020 }
 0x6e6   :  { %v1023_v23 = vpop.eup %1022  ;;  %v790_v24 = vmul.f32 %v1021_v22, %v786_v20 }
 0x6e7   :  { %v789_v25 = vmul.f32 %v1023_v23, %v783_v21 }
 0x6e8   :  { %v792_v26 = vsub.f32 2.0, %v790_v24 }
 0x6e9   :  { %v791_v27 = vsub.f32 2.0, %v789_v25 }
 0x6ea   :  { %v794_v28 = vmul.f32 %v1021_v22, %v792_v26 }
 0x6eb   :  { %v793_v29 = vmul.f32 %v1023_v23, %v791_v27 }
 0x6ec   :  { %v796_v31 = vmul.f32 %v1017_v18, %v794_v28 }
 0x6ed   :  { %v795_v32 = vmul.f32 %v1019_v19, %v793_v29 }
 0x6ef   :  { %991 = vmatprep.mubr.msk.f32.mxu0 %vm130_vm2, %v795_v32 }
 0x6f0   :  { %992 = vmatmul.mubr.msk.f32.vlgmr.msra.gmra.mxu0 %vm130_vm2, %v796_v31 }
 0x7b0   :  { %v993_v34 = vpop.f32.mrf.mxu0 }
 0x7b1   :  { %v882_v35 = vadd.f32 %v993_v34, %v911_v33 }
 0x7b2   :  { %v876_v36 = vpop.f32.mrf.mxu0 }
 0x7b3   :  { %886 = vst.msk [vmem:[%s1220_s11 + $0x8] sm:$0xff] %vm43_vm1, %v882_v35  ;;  %v877_v37 = vadd.f32 %v911_v33, %v876_v36 }
 0x7b5   :  { %885 = vst.msk [vmem:[%s1220_s11] sm:$0xff] %vm43_vm1, %v877_v37 }

</bundles_post_ra>
